<compile_context>
chip_gen: v7x
topology: tpu7x:2x2x1
jax: 0.10.0
libtpu: 0.0.40
codegen_flags: <defaults>
</compile_context>

<pallas_src>
import functools

import jax
import jax.numpy as jnp
from jax.experimental import pallas as pl
from jax.experimental.pallas import tpu as pltpu

LANE = 128
SUBLANE = 8
MAX_BLOCK_ROWS = 1024  # (1024, 128) f32 = 512 KiB per input block; 2 inputs x 2 bufs = 2 MiB VMEM


def _focal_loss_partial_kernel(x_ref, t_ref, o_ref, *, gamma, alpha):
    x = x_ref[...].astype(jnp.float32)
    t = t_ref[...].astype(jnp.float32)

    # Share exp(-|x|) between the numerically-stable BCE-with-logits and sigmoid.
    e = jnp.exp(-jnp.abs(x))
    bce = jnp.maximum(x, 0.0) - x * t + jnp.log1p(e)
    p = jnp.where(x >= 0.0, 1.0, e) / (1.0 + e)  # == sigmoid(x), reuses e

    p_t = p * t + (1.0 - p) * (1.0 - t)
    w = 1.0 - p_t

    g = float(gamma)
    if g == 2.0:
        focal_weight = w * w                      # one VPU mul instead of exp/log pow
    elif g.is_integer() and g >= 0.0:
        focal_weight = jnp.ones_like(w)
        for _ in range(int(g)):
            focal_weight = focal_weight * w
    else:
        focal_weight = w ** g                     # generic (non-integer) gamma

    loss = focal_weight * bce
    if alpha is not None:
        alpha_t = alpha * t + (1.0 - alpha) * (1.0 - t)
        loss = alpha_t * loss

    # Reduce the (block_rows, 128) tile to a single (8, 128) vreg using only
    # tile-aligned static slices + VPU adds (no relayout, no XLU, no SMEM RMW).
    block_rows = loss.shape[0]
    partial = loss[0:SUBLANE, :]
    for r in range(1, block_rows // SUBLANE):
        partial = partial + loss[r * SUBLANE:(r + 1) * SUBLANE, :]

    o_ref[0, :, :] = partial


def binary_focal_loss(inputs, targets, gamma=2.0, alpha=0.25):
    """Pallas TPU implementation of BinaryFocalLoss(gamma, alpha, reduction='mean')."""
    n = inputs.size
    rows = pl.cdiv(n, LANE)
    if rows <= MAX_BLOCK_ROWS:
        block_rows = pl.cdiv(rows, SUBLANE) * SUBLANE
    else:
        block_rows = MAX_BLOCK_ROWS
    num_blocks = pl.cdiv(rows, block_rows)
    rows_pad = num_blocks * block_rows
    n_pad = rows_pad * LANE

    x = inputs.reshape(-1)
    t = targets.reshape(-1)
    if not jnp.issubdtype(t.dtype, jnp.floating):
        t = t.astype(x.dtype)

    if n_pad != n:
        # Sentinel padding: logit=-100 / target=0 gives a focal weight that
        # underflows to exactly 0 in f32, so the padded elements contribute 0
        # to the sum and no per-element mask is needed inside the kernel.
        x = jnp.pad(x, (0, n_pad - n), constant_values=-100.0)
        t = jnp.pad(t, (0, n_pad - n), constant_values=0.0)

    x = x.reshape(rows_pad, LANE)
    t = t.reshape(rows_pad, LANE)

    kernel = functools.partial(_focal_loss_partial_kernel, gamma=gamma, alpha=alpha)

    partials = pl.pallas_call(
        kernel,
        out_shape=jax.ShapeDtypeStruct((num_blocks, SUBLANE, LANE), jnp.float32),
        grid_spec=pltpu.PrefetchScalarGridSpec(
            num_scalar_prefetch=0,
            grid=(num_blocks,),
            in_specs=[
                pl.BlockSpec((block_rows, LANE), lambda i: (i, 0)),
                pl.BlockSpec((block_rows, LANE), lambda i: (i, 0)),
            ],
            out_specs=pl.BlockSpec((1, SUBLANE, LANE), lambda i: (i, 0, 0)),
        ),
        compiler_params=pltpu.CompilerParams(
            dimension_semantics=("parallel",),
        ),
    )(x, t)

    # reduction='mean': tiny final combine outside the kernel keeps the grid
    # fully parallel across cores/steps.
    # TODO(synk): only reduction='mean' (the module default) is implemented here.
    return jnp.sum(partials) / jnp.float32(n)


def _reference(inputs, targets, gamma=2.0, alpha=0.25):
    x = inputs.astype(jnp.float32)
    t = targets.astype(jnp.float32)
    bce = jnp.maximum(x, 0.0) - x * t + jnp.log1p(jnp.exp(-jnp.abs(x)))
    p = jax.nn.sigmoid(x)
    p_t = p * t + (1.0 - p) * (1.0 - t)
    fw = (1.0 - p_t) ** gamma
    a_t = alpha * t + (1.0 - alpha) * (1.0 - t)
    return jnp.mean(a_t * fw * bce)


if __name__ == "__main__":
    key = jax.random.PRNGKey(0)
    k1, k2 = jax.random.split(key)

    # Small shapes consistent with a segmentation-style logits map: NCHW [2, 4, 16, 16].
    logits = jax.random.normal(k1, (2, 4, 16, 16), dtype=jnp.float32)
    targets = (jax.random.uniform(k2, (2, 4, 16, 16)) > 0.5).astype(jnp.float32)

    loss = binary_focal_loss(logits, targets, gamma=2.0, alpha=0.25)
    loss = jax.block_until_ready(loss)

    ref = _reference(logits, targets, gamma=2.0, alpha=0.25)
    assert jnp.allclose(loss, ref, rtol=1e-5, atol=1e-6), (loss, ref)

    print("KERNEL_OK")
</pallas_src>

<mosaic_0001>
module attributes {stable_mosaic.version = 11 : i64} {
  func.func @_focal_loss_partial_kernel(%arg0: i32, %arg1: memref<16x128xf32, #tpu.memory_space<vmem>>, %arg2: memref<16x128xf32, #tpu.memory_space<vmem>>, %arg3: memref<1x8x128xf32, #tpu.memory_space<vmem>>) attributes {dimension_semantics = [#tpu.dimension_semantics<parallel>], iteration_bounds = array<i64: 1>, scalar_prefetch = 0 : i64, scratch_operands = 0 : i64, tpu.core_type = #tpu.core_type<tc>, window_params = [{transform_indices = @transform_0, window_bounds = array<i64: 16, 128>}, {transform_indices = @transform_1, window_bounds = array<i64: 16, 128>}, {transform_indices = @transform_2, window_bounds = array<i64: 1, 8, 128>}]} {
    %c0 = arith.constant 0 : index
    %c0_0 = arith.constant 0 : index
    %0 = vector.load %arg1[%c0, %c0_0] : memref<16x128xf32, #tpu.memory_space<vmem>>, vector<16x128xf32>
    %c0_1 = arith.constant 0 : index
    %c0_2 = arith.constant 0 : index
    %1 = vector.load %arg2[%c0_1, %c0_2] : memref<16x128xf32, #tpu.memory_space<vmem>>, vector<16x128xf32>
    %2 = math.absf %0 : vector<16x128xf32>
    %cst = arith.constant 0.000000e+00 : f32
    %3 = vector.broadcast %cst : f32 to vector<16x128xf32>
    %4 = arith.subf %3, %2 : vector<16x128xf32>
    %5 = math.exp %4 : vector<16x128xf32>
    %cst_3 = arith.constant 0.000000e+00 : f32
    %6 = vector.broadcast %cst_3 : f32 to vector<16x128xf32>
    %7 = arith.maximumf %0, %6 : vector<16x128xf32>
    %8 = arith.mulf %0, %1 : vector<16x128xf32>
    %9 = arith.subf %7, %8 : vector<16x128xf32>
    %10 = math.log1p %5 : vector<16x128xf32>
    %11 = arith.addf %9, %10 : vector<16x128xf32>
    %cst_4 = arith.constant 0.000000e+00 : f32
    %12 = vector.broadcast %cst_4 : f32 to vector<16x128xf32>
    %13 = arith.cmpf oge, %0, %12 : vector<16x128xf32>
    %cst_5 = arith.constant 1.000000e+00 : f32
    %14 = vector.broadcast %cst_5 : f32 to vector<16x128xf32>
    %15 = arith.select %13, %14, %5 : vector<16x128xi1>, vector<16x128xf32>
    %cst_6 = arith.constant 1.000000e+00 : f32
    %16 = vector.broadcast %cst_6 : f32 to vector<16x128xf32>
    %17 = arith.addf %16, %5 : vector<16x128xf32>
    %18 = arith.divf %15, %17 : vector<16x128xf32>
    %19 = arith.mulf %18, %1 : vector<16x128xf32>
    %cst_7 = arith.constant 1.000000e+00 : f32
    %20 = vector.broadcast %cst_7 : f32 to vector<16x128xf32>
    %21 = arith.subf %20, %18 : vector<16x128xf32>
    %cst_8 = arith.constant 1.000000e+00 : f32
    %22 = vector.broadcast %cst_8 : f32 to vector<16x128xf32>
    %23 = arith.subf %22, %1 : vector<16x128xf32>
    %24 = arith.mulf %21, %23 : vector<16x128xf32>
    %25 = arith.addf %19, %24 : vector<16x128xf32>
    %cst_9 = arith.constant 1.000000e+00 : f32
    %26 = vector.broadcast %cst_9 : f32 to vector<16x128xf32>
    %27 = arith.subf %26, %25 : vector<16x128xf32>
    %28 = arith.mulf %27, %27 : vector<16x128xf32>
    %29 = arith.mulf %28, %11 : vector<16x128xf32>
    %cst_10 = arith.constant 2.500000e-01 : f32
    %30 = vector.broadcast %cst_10 : f32 to vector<16x128xf32>
    %31 = arith.mulf %30, %1 : vector<16x128xf32>
    %cst_11 = arith.constant 1.000000e+00 : f32
    %32 = vector.broadcast %cst_11 : f32 to vector<16x128xf32>
    %33 = arith.subf %32, %1 : vector<16x128xf32>
    %cst_12 = arith.constant 7.500000e-01 : f32
    %34 = vector.broadcast %cst_12 : f32 to vector<16x128xf32>
    %35 = arith.mulf %34, %33 : vector<16x128xf32>
    %36 = arith.addf %31, %35 : vector<16x128xf32>
    %37 = arith.mulf %36, %29 : vector<16x128xf32>
    %38 = vector.extract_strided_slice %37 {offsets = [0, 0], sizes = [8, 128], strides = [1, 1]} : vector<16x128xf32> to vector<8x128xf32>
    %39 = vector.extract_strided_slice %37 {offsets = [8, 0], sizes = [8, 128], strides = [1, 1]} : vector<16x128xf32> to vector<8x128xf32>
    %40 = arith.addf %38, %39 : vector<8x128xf32>
    %c0_13 = arith.constant 0 : index
    %c0_14 = arith.constant 0 : index
    %c0_15 = arith.constant 0 : index
    %41 = vector.load %arg3[%c0_13, %c0_14, %c0_15] : memref<1x8x128xf32, #tpu.memory_space<vmem>>, vector<1x8x128xf32>
    %42 = vector.shape_cast %41 : vector<1x8x128xf32> to vector<8x128xf32>
    %43 = vector.shape_cast %40 : vector<8x128xf32> to vector<1x8x128xf32>
    tpu.vector_store %arg3[%c0_13, %c0_14, %c0_15], %43 {strides = array<i32>} : memref<1x8x128xf32, #tpu.memory_space<vmem>>, vector<1x8x128xf32>,
    return
  }
  func.func @transform_0(%arg0: i32) -> (i32, i32) {
    %c0_i32 = arith.constant 0 : i32
    %c0_i32_0 = arith.constant 0 : i32
    return %arg0, %c0_i32 : i32, i32
  }
  func.func @transform_1(%arg0: i32) -> (i32, i32) {
    %c0_i32 = arith.constant 0 : i32
    %c0_i32_0 = arith.constant 0 : i32
    return %arg0, %c0_i32 : i32, i32
  }
  func.func @transform_2(%arg0: i32) -> (i32, i32, i32) {
    %c0_i32 = arith.constant 0 : i32
    %c0_i32_0 = arith.constant 0 : i32
    %c0_i32_1 = arith.constant 0 : i32
    return %arg0, %c0_i32, %c0_i32_0 : i32, i32, i32
  }
}

</mosaic_0001>

<bundles_post_ra>
// kernel: tpu_custom_call.1
= control target key start
LH: loop header
LB: loop body
LE: loop exit
PB: predicated region body
PF: predicated region fallthrough
CT: control target
= control target key end

     0   :  { %7 = vsyncpa [#allocation3], 0  ;;  %s287_s0 = inlined_call_operand.hbm [shape: f32[16,128], index: 0, kind: input, shape index: {}]   ;;  %s288_s1 = inlined_call_operand.hbm [shape: f32[16,128], index: 1, kind: input, shape index: {}]   ;;  %s289_s2 = inlined_call_operand.hbm [shape: f32[1,8,128], index: 2, kind: output, shape index: {}]  }
   0x1   :  { %8 = vsyncpa [#allocation6], 0 }
   0x2   :  { %9 = vsyncpa [#allocation4], 0  ;;  %s219_s9 = smov [#allocation2]   ;;  %s147_s13 = scalar_lea.hbm %s287_s0, 256 }
   0x3   :  { %s15_s10 = sshll.u32 %s219_s9, 4  ;;  %p148_p0 = scmp.ne.s32.totalorder %s287_s0, %s147_s13  ;;  %s16_s10 = int_to_ptr.vmem [resolvable:$true] %s15_s10 }
   0x4   :  { %p151_p1 = scmp.lt.u32.totalorder %s147_s13, %s287_s0 }
   0x6   :  { %p153_p2 = pnand %p151_p1, %p148_p0 }
   0x8   :  { %156 = shalt.err (!%p153_p2)
}
   0x9   :  { %s157_s18 = scalar_lea.vmem %s16_s10, 256  ;;  %p162_p4 = scmp.lt.s32.totalorder %s16_s10, %s16_s10 }
   0xa   :  { %p158_p3 = scmp.ne.s32.totalorder %s16_s10, %s157_s18  ;;  %p163_p5 = scmp.lt.s32.totalorder %s157_s18, %s157_s18 }
   0xc   :  { %p164_p6 = por %p163_p5, %p162_p4 }
   0xe   :  { %p165_p7 = pnand %p164_p6, %p158_p3 }
  0x10   :  { %168 = shalt.err (!%p165_p7)
}
  0x11   :  { %s220_s19 = smov 128   ;;  %s221_s20 = smov 8  }
  0x12   :  { %21 = dma.hbm_to_vmem [thread:$0]  %s287_s0, 256, %s16_s10, [#allocation3], %s220_s19, %s220_s19, %s221_s20  }
  0x13   :  { %s222_s23 = smov [#allocation5]   ;;  %s169_s27 = scalar_lea.hbm %s288_s1, 256 }
  0x14   :  { %s27_s24 = sshll.u32 %s222_s23, 4  ;;  %p170_p8 = scmp.ne.s32.totalorder %s288_s1, %s169_s27  ;;  %s28_s24 = int_to_ptr.vmem [resolvable:$true] %s27_s24 }
  0x15   :  { %p173_p9 = scmp.lt.u32.totalorder %s169_s27, %s288_s1 }
  0x17   :  { %p175_p10 = pnand %p173_p9, %p170_p8 }
  0x19   :  { %178 = shalt.err (!%p175_p10)
}
  0x1a   :  { %s179_s4 = scalar_lea.vmem %s28_s24, 256  ;;  %p184_p12 = scmp.lt.s32.totalorder %s28_s24, %s28_s24 }
  0x1b   :  { %p180_p11 = scmp.ne.s32.totalorder %s28_s24, %s179_s4  ;;  %p185_p13 = scmp.lt.s32.totalorder %s179_s4, %s179_s4 }
  0x1d   :  { %p186_p0 = por %p185_p13, %p184_p12 }
  0x1f   :  { %p187_p1 = pnand %p186_p0, %p180_p11 }
  0x21   :  { %190 = shalt.err (!%p187_p1)
}
  0x22   :  { %33 = dma.hbm_to_vmem [thread:$0]  %s288_s1, 256, %s28_s24, [#allocation6], %s220_s19, %s220_s19, %s221_s20  }
  0x23   :  { %213 = dma.done.wait [#allocation3], 256  }
  0x24   :  { %214 = vsyncadd [#allocation3], 4294967040 }
  0x25   :  { %215 = dma.done.wait [#allocation6], 256  }
  0x26   :  { %216 = vsyncadd [#allocation6], 4294967040  ;;  %v40_v0 = vld [vmem:[#allocation2] sm:$0xff]  ;;  %v41_v1 = vld [vmem:[#allocation2 + $0x8] sm:$0xff]  ;;  %s223_s1 = smov [#allocation7]  }
  0x27   :  { %v44_v2 = vand.u32 2147483647, %v40_v0  ;;  %v45_v3 = vand.u32 2147483647, %v41_v1  ;;  %vm78_vm0 = vcmp.ge.f32.partialorder %v40_v0, 0.0  ;;  %vm79_vm1 = vcmp.ge.f32.partialorder %v41_v1, 0.0 }
  0x28   :  { %v42_v15 = vld [vmem:[#allocation5] sm:$0xff]  ;;  %v43_v16 = vld [vmem:[#allocation5 + $0x8] sm:$0xff]  ;;  %v52_v24 = vmax.f32 %v40_v0, 0.0  ;;  %v53_v25 = vmax.f32 %v41_v1, 0.0  ;;  %s120_s6 = sshll.u32 %s223_s1, 4  ;;  %s121_s6 = int_to_ptr.vmem [resolvable:$true] %s120_s6 }
  0x29   :  { %v46_v4 = vsub.f32 0.0, %v44_v2  ;;  %v47_v5 = vsub.f32 0.0, %v45_v3  ;;  %v54_v26 = vmul.f32 %v42_v15, %v40_v0  ;;  %v55_v29 = vmul.f32 %v43_v16, %v41_v1  ;;  %s191_s7 = scalar_lea.vmem %s121_s6, 128  ;;  %p196_p3 = scmp.lt.s32.totalorder %s121_s6, %s121_s6 }
  0x2a   :  { %v92_v31 = vsub.f32 1.0, %v42_v15  ;;  %v93_v32 = vsub.f32 1.0, %v43_v16  ;;  %v104_v51 = vmul.f32 0.25, %v42_v15  ;;  %v105_v54 = vmul.f32 0.25, %v43_v16  ;;  %p192_p2 = scmp.ne.s32.totalorder %s121_s6, %s191_s7  ;;  %p197_p4 = scmp.lt.s32.totalorder %s191_s7, %s191_s7 }
  0x2b   :  { %v48_v6 = vmul.f32 1.442695, %v46_v4  ;;  %v50_v7 = vmul.f32 1.442695, %v47_v5  ;;  %v56_v44 = vsub.f32 %v52_v24, %v54_v26  ;;  %v57_v46 = vsub.f32 %v53_v25, %v55_v29 }
  0x2c   :  { %v106_v52 = vmul.f32 0.75, %v92_v31  ;;  %v107_v55 = vmul.f32 0.75, %v93_v32  ;;  %p198_p5 = por %p197_p4, %p196_p3 }
  0x2d   :  { %135 = vpow2.f32 %v48_v6 }
  0x2e   :  { %137 = vpow2.f32 %v50_v7  ;;  %v108_v61 = vadd.f32 %v106_v52, %v104_v51  ;;  %v109_v63 = vadd.f32 %v107_v55, %v105_v54  ;;  %p199_p6 = pnand %p198_p5, %p192_p2 }
  0x37   :  { %v136_v8 = vpop.eup %135 }
  0x38   :  { %v138_v9 = vpop.eup %137  ;;  %v58_v10 = vadd.f32 1.0, %v136_v8  ;;  %v61_v12 = vmul.f32 -0.5, %v136_v8  ;;  %v64_v18 = vand.u32 2147483647, %v136_v8  ;;  %v80_v19 = vsel %vm78_vm0, 1.0, %v136_v8 }
  0x39   :  { %v67_v11 = vadd.f32 1.0, %v138_v9  ;;  %v70_v13 = vmul.f32 -0.5, %v138_v9  ;;  %v81_v22 = vsel %vm79_vm1, 1.0, %v138_v9  ;;  %v73_v27 = vand.u32 2147483647, %v138_v9 }
  0x3a   :  { %139 = vlog2.f32 %v58_v10  ;;  %v62_v17 = vadd.f32 1.0, %v61_v12  ;;  %vm263_vm2 = vcmp.lt.f32.partialorder %v64_v18, 0.0004427343 }
  0x3b   :  { %141 = vlog2.f32 %v67_v11  ;;  %v71_v21 = vadd.f32 1.0, %v70_v13  ;;  %vm267_vm3 = vcmp.lt.f32.partialorder %v73_v27, 0.0004427343 }
  0x3c   :  { %143 = vrcp.f32 %v58_v10  ;;  %v63_v34 = vmul.f32 %v136_v8, %v62_v17 }
  0x3d   :  { %145 = vrcp.f32 %v67_v11  ;;  %v72_v38 = vmul.f32 %v138_v9, %v71_v21 }
  0x44   :  { %v140_v14 = vpop.eup %139 }
  0x45   :  { %v142_v20 = vpop.eup %141  ;;  %v60_v33 = vmul.f32 0.6931472, %v140_v14 }
  0x46   :  { %v144_v23 = vpop.eup %143  ;;  %v69_v37 = vmul.f32 0.6931472, %v142_v20 }
  0x47   :  { %v146_v28 = vpop.eup %145  ;;  %v85_v30 = vmul.f32 %v144_v23, %v80_v19  ;;  %v66_v47 = vsel %vm263_vm2, %v63_v34, %v60_v33 }
  0x48   :  { %v87_v36 = vmul.f32 %v146_v28, %v81_v22  ;;  %v75_v49 = vsel %vm267_vm3, %v72_v38, %v69_v37  ;;  %v76_v56 = vadd.f32 %v66_v47, %v56_v44 }
  0x49   :  { %v88_v39 = vmul.f32 %v85_v30, %v42_v15  ;;  %v90_v40 = vsub.f32 1.0, %v85_v30  ;;  %v77_v58 = vadd.f32 %v75_v49, %v57_v46 }
  0x4a   :  { %v89_v42 = vmul.f32 %v87_v36, %v43_v16  ;;  %v91_v43 = vsub.f32 1.0, %v87_v36 }
  0x4b   :  { %v94_v45 = vmul.f32 %v92_v31, %v90_v40 }
  0x4c   :  { %v95_v48 = vmul.f32 %v93_v32, %v91_v43 }
  0x4d   :  { %v96_v50 = vadd.f32 %v94_v45, %v88_v39 }
  0x4e   :  { %v97_v53 = vadd.f32 %v95_v48, %v89_v42 }
  0x4f   :  { %v98_v57 = vsub.f32 1.0, %v96_v50 }
  0x50   :  { %v99_v59 = vsub.f32 1.0, %v97_v53 }
  0x51   :  { %v100_v60 = vmul.f32 %v98_v57, %v98_v57 }
  0x52   :  { %v101_v62 = vmul.f32 %v99_v59, %v99_v59 }
  0x53   :  { %v102_v0 = vmul.f32 %v100_v60, %v76_v56 }
  0x54   :  { %v103_v1 = vmul.f32 %v101_v62, %v77_v58 }
  0x55   :  { %v110_v2 = vmul.f32 %v108_v61, %v102_v0 }
  0x56   :  { %v111_v3 = vmul.f32 %v109_v63, %v103_v1 }
  0x58   :  { %v112_v4 = vadd.f32 %v111_v3, %v110_v2 }
  0x5a   :  { %113 = vst [vmem:[#allocation7] sm:$0xff] %v112_v4 }
  0x5b   :  { %202 = shalt.err (!%p199_p6)
}
  0x5c   :  { %s203_s10 = scalar_lea.hbm %s289_s2, 128 }
  0x5d   :  { %p204_p7 = scmp.ne.s32.totalorder %s289_s2, %s203_s10  ;;  %p207_p8 = scmp.lt.u32.totalorder %s203_s10, %s289_s2 }
  0x5f   :  { %p209_p9 = pnand %p207_p8, %p204_p7 }
  0x61   :  { %212 = shalt.err (!%p209_p9)
}
  0x62   :  { %123 = dma.vmem_to_hbm [thread:$0]  %s121_s6, 128, %s289_s2, [#allocation4]  }
  0x63   :  { %217 = dma.done.wait [#allocation4], 128  }
  0x64   :  { %218 = vsyncadd [#allocation4], 4294967168 }
  0x65   :  { %127 = vsyncpa [#allocation3], 1 }
  0x66   :  { %128 = vsyncpa [#allocation6], 1 }
  0x67   :  { %129 = vsyncpa [#allocation4], 1 }

</bundles_post_ra>
